<compile_context>
chip_gen: v5e
topology: v5e:2x2
jax: 0.10.0
libtpu: 0.0.40
codegen_flags: <defaults>
</compile_context>

<pallas_src>
import jax
import jax.numpy as jnp
from jax.experimental import pallas as pl
from jax.experimental.pallas import tpu as pltpu


def _round_up(n, m):
    return ((n + m - 1) // m) * m


def _softplus(x):
    # Numerically robust softplus; matches torch.nn.functional.softplus
    # (beta=1, threshold=20) to well below the bf16 tolerance.
    return jnp.maximum(x, 0.0) + jnp.log1p(jnp.exp(-jnp.abs(x)))


def encoder_kernel(x_ref, w1_ref, b1_ref, w2_ref, b2_ref, w3_ref, b3_ref, o_ref):
    # Stream x in its native dtype (f32) and cast to bf16 on-chip for the MXU.
    x = x_ref[...].astype(jnp.bfloat16)                            # (TB, V)

    # fc1 + softplus (bf16 MXU operands, f32 accumulation / activation math)
    h = jnp.dot(x, w1_ref[...], preferred_element_type=jnp.float32) + b1_ref[...]
    h = _softplus(h).astype(jnp.bfloat16)

    # fc2 + softplus
    h = jnp.dot(h, w2_ref[...], preferred_element_type=jnp.float32) + b2_ref[...]
    h = _softplus(h).astype(jnp.bfloat16)

    # Dropout: identity at inference (eval mode).
    # TODO(synk): training-mode dropout would use pltpu.prng_seed/prng_random_bits.

    # fc3 + softmax over dim=1.  Padded topic lanes have a -1e30 bias, so
    # exp(·) == 0 there and the real-lane softmax is unaffected.
    logits = jnp.dot(h, w3_ref[...], preferred_element_type=jnp.float32) + b3_ref[...]
    m = jnp.max(logits, axis=1, keepdims=True)
    e = jnp.exp(logits - m)
    denom = jnp.sum(e, axis=1, keepdims=True)
    o_ref[...] = (e / denom).astype(o_ref.dtype)                   # exact normalization


def prepare_params(params, hidden_pad, topics_pad):
    """Pad weights/biases to MXU/lane-friendly shapes; weights -> bf16, biases f32.

    Call ONCE and cache the result (hoisted out of the per-call path).

    Correctness of the padding:
      * padded w1/w2 output columns & b1/b2 lanes are zero -> padded hidden
        lanes hold softplus(0) = log 2, but the corresponding *rows* of the
        next weight matrix are zero, so they contribute nothing downstream;
      * padded w3 columns are zero and padded b3 lanes are -1e30, so padded
        logits vanish under exp() and the softmax over real lanes is exact.
    """
    w1, b1, w2, b2, w3, b3 = params
    V, H = w1.shape
    T = w3.shape[1]

    w1_p = jnp.zeros((V, hidden_pad), jnp.float32).at[:, :H].set(w1).astype(jnp.bfloat16)
    b1_p = jnp.zeros((1, hidden_pad), jnp.float32).at[:, :H].set(b1)
    w2_p = jnp.zeros((hidden_pad, hidden_pad), jnp.float32).at[:H, :H].set(w2).astype(jnp.bfloat16)
    b2_p = jnp.zeros((1, hidden_pad), jnp.float32).at[:, :H].set(b2)
    w3_p = jnp.zeros((hidden_pad, topics_pad), jnp.float32).at[:H, :T].set(w3).astype(jnp.bfloat16)
    b3_p = jnp.full((1, topics_pad), -1e30, jnp.float32).at[:, :T].set(b3)
    return w1_p, b1_p, w2_p, b2_p, w3_p, b3_p


def _pick_batch_tile(B, batch_tile):
    """Batch tile: multiple of 16, >= 2 grid steps when B allows (v7x megacore)."""
    if B <= 16:
        return _round_up(B, 8)
    if B <= 2 * batch_tile:
        # Split into (at least) 2 grid steps so ("parallel",) uses both
        # TensorCores on v7x; no-op on single-TC v5e/v6e.
        return min(_round_up(batch_tile, 16), _round_up(pl.cdiv(B, 2), 16))
    return _round_up(batch_tile, 16)


def encoder_forward(x, padded_params, num_topics, *, batch_tile=512):
    """x: [B, vocab_size] (f32 or bf16) -> softmax topic probabilities [B, num_topics] f32.

    `padded_params` must come from prepare_params() (cached, not rebuilt per call).
    """
    w1_p, b1_p, w2_p, b2_p, w3_p, b3_p = padded_params
    B, V = x.shape
    assert V == w1_p.shape[0]
    H_pad = w1_p.shape[1]
    T_pad = w3_p.shape[1]
    # TODO(synk): if V is not a multiple of 128, padding V (zero x columns /
    # zero w1 rows) at the data producer avoids masked loads on the largest
    # streamed operand; kept unpadded here to avoid a host-side pass over x.

    TB = _pick_batch_tile(B, batch_tile)
    grid = (pl.cdiv(B, TB),)

    try:
        vmem_cap = int(pltpu.get_tpu_info().vmem_capacity_bytes)
    except Exception:
        vmem_cap = 64 << 20  # conservative floor (v7x per-TC)

    def run(single_buffer_weights):
        # Constant-index_map operands never change across grid steps -> one
        # buffer is enough; this halves the resident-weight VMEM footprint.
        res_kw = {"pipeline_mode": pl.Buffered(1)} if single_buffer_weights else {}
        wmul = 1 if single_buffer_weights else 2

        weight_bytes = (w1_p.size + w2_p.size + w3_p.size) * 2 * wmul      # bf16
        bias_bytes = (b1_p.size + b2_p.size + b3_p.size) * 4 * wmul        # f32
        stream_bytes = 2 * TB * V * x.dtype.itemsize + 2 * TB * T_pad * 4  # dbl-buffered
        est = weight_bytes + bias_bytes + stream_bytes + (4 << 20)          # + slack
        vmem_limit = int(min(int(0.75 * vmem_cap), max(32 << 20, est)))

        return pl.pallas_call(
            encoder_kernel,
            out_shape=jax.ShapeDtypeStruct((B, T_pad), jnp.float32),
            grid=grid,
            in_specs=[
                pl.BlockSpec((TB, V), lambda i: (i, 0)),                     # x: streamed
                pl.BlockSpec((V, H_pad), lambda i: (0, 0), **res_kw),        # w1: resident
                pl.BlockSpec((1, H_pad), lambda i: (0, 0), **res_kw),        # b1
                pl.BlockSpec((H_pad, H_pad), lambda i: (0, 0), **res_kw),    # w2
                pl.BlockSpec((1, H_pad), lambda i: (0, 0), **res_kw),        # b2
                pl.BlockSpec((H_pad, T_pad), lambda i: (0, 0), **res_kw),    # w3
                pl.BlockSpec((1, T_pad), lambda i: (0, 0), **res_kw),        # b3
            ],
            out_specs=pl.BlockSpec((TB, T_pad), lambda i: (i, 0)),
            compiler_params=pltpu.CompilerParams(
                dimension_semantics=("parallel",),
                vmem_limit_bytes=vmem_limit),
        )(x, w1_p, b1_p, w2_p, b2_p, w3_p, b3_p)

    try:
        out = jax.block_until_ready(run(True))
    except Exception:
        # Fallback for jax builds that reject Buffered(1) on pallas_call specs.
        out = run(False)

    return out[:, :num_topics]


def init_params(key, vocab_size, num_topics, hidden):
    """Deterministic PyTorch-Linear-style init (uniform +/- 1/sqrt(fan_in)), f32, unpadded."""
    ks = jax.random.split(key, 6)

    def lin(kw, kb, fan_in, fan_out):
        bound = 1.0 / jnp.sqrt(fan_in)
        w = jax.random.uniform(kw, (fan_in, fan_out), jnp.float32, -bound, bound)
        b = jax.random.uniform(kb, (1, fan_out), jnp.float32, -bound, bound)
        return w, b

    w1, b1 = lin(ks[0], ks[1], vocab_size, hidden)
    w2, b2 = lin(ks[2], ks[3], hidden, hidden)
    w3, b3 = lin(ks[4], ks[5], hidden, num_topics)
    return (w1, b1, w2, b2, w3, b3)


def encoder_ref(x, params):
    """Pure-JAX f32 reference (matches the PyTorch forward in eval mode)."""
    w1, b1, w2, b2, w3, b3 = params
    h = jax.nn.softplus(x @ w1 + b1)
    h = jax.nn.softplus(h @ w2 + b2)
    return jax.nn.softmax(h @ w3 + b3, axis=1)


if __name__ == "__main__":
    vocab_size, num_topics, hidden = 64, 8, 32
    batch = 8

    key = jax.random.PRNGKey(0)
    k_x, k_p = jax.random.split(key)

    # Synthetic bag-of-words-like input (non-negative), as the Encoder expects.
    x = jax.random.uniform(k_x, (batch, vocab_size), jnp.float32, 0.0, 3.0)
    params = init_params(k_p, vocab_size, num_topics, hidden)

    # Pad + cast the weights ONCE (hoisted out of the per-call path).
    H_pad = _round_up(max(hidden, 128), 128)
    T_pad = _round_up(max(num_topics, 128), 128)
    padded_params = jax.block_until_ready(prepare_params(params, H_pad, T_pad))

    out = jax.block_until_ready(encoder_forward(x, padded_params, num_topics))
    ref = encoder_ref(x, params)

    # sanity: shape, rows of a softmax sum to 1 (exact divide -> tight), and
    # agreement with the f32 reference (loose tolerance: bf16 matmul operands).
    assert out.shape == (batch, num_topics)
    assert bool(jnp.all(jnp.abs(jnp.sum(out, axis=1) - 1.0) < 2e-3))
    assert bool(jnp.all(jnp.abs(out - ref) < 3e-2))

    print("KERNEL_OK")
</pallas_src>

<mosaic_0001>
module attributes {stable_mosaic.version = 11 : i64} {
  func.func @encoder_kernel(%arg0: i32, %arg1: memref<8x64xf32, #tpu.memory_space<vmem>>, %arg2: memref<64x128xbf16, #tpu.memory_space<vmem>>, %arg3: memref<1x128xf32, #tpu.memory_space<vmem>>, %arg4: memref<128x128xbf16, #tpu.memory_space<vmem>>, %arg5: memref<1x128xf32, #tpu.memory_space<vmem>>, %arg6: memref<128x128xbf16, #tpu.memory_space<vmem>>, %arg7: memref<1x128xf32, #tpu.memory_space<vmem>>, %arg8: memref<8x128xf32, #tpu.memory_space<vmem>>) attributes {dimension_semantics = [#tpu.dimension_semantics<parallel>], iteration_bounds = array<i64: 1>, scalar_prefetch = 0 : i64, scratch_operands = 0 : i64, tpu.core_type = #tpu.core_type<tc>, window_params = [{transform_indices = @transform_0, window_bounds = array<i64: 8, 64>}, {pipeline_mode = #tpu.pipeline_mode<synchronous>, transform_indices = @transform_1, window_bounds = array<i64: 64, 128>}, {pipeline_mode = #tpu.pipeline_mode<synchronous>, transform_indices = @transform_2, window_bounds = array<i64: 1, 128>}, {pipeline_mode = #tpu.pipeline_mode<synchronous>, transform_indices = @transform_3, window_bounds = array<i64: 128, 128>}, {pipeline_mode = #tpu.pipeline_mode<synchronous>, transform_indices = @transform_4, window_bounds = array<i64: 1, 128>}, {pipeline_mode = #tpu.pipeline_mode<synchronous>, transform_indices = @transform_5, window_bounds = array<i64: 128, 128>}, {pipeline_mode = #tpu.pipeline_mode<synchronous>, transform_indices = @transform_6, window_bounds = array<i64: 1, 128>}, {transform_indices = @transform_7, window_bounds = array<i64: 8, 128>}]} {
    %c0 = arith.constant 0 : index
    %c0_0 = arith.constant 0 : index
    %0 = vector.load %arg1[%c0, %c0_0] : memref<8x64xf32, #tpu.memory_space<vmem>>, vector<8x64xf32>
    %1 = arith.truncf %0 : vector<8x64xf32> to vector<8x64xbf16>
    %c0_1 = arith.constant 0 : index
    %c0_2 = arith.constant 0 : index
    %2 = vector.load %arg2[%c0_1, %c0_2] : memref<64x128xbf16, #tpu.memory_space<vmem>>, vector<64x128xbf16>
    %cst = arith.constant dense<0.000000e+00> : vector<8x128xf32>
    %3 = tpu.matmul %1, %2, %cst {dimension_numbers = #tpu.dot_dimension_numbers<[1], [0], [0], [1], [0, 0, 1, 1], [], []>} : vector<8x64xbf16>, vector<64x128xbf16>, vector<8x128xf32> -> vector<8x128xf32>
    %c0_3 = arith.constant 0 : index
    %c0_4 = arith.constant 0 : index
    %4 = vector.load %arg3[%c0_3, %c0_4] : memref<1x128xf32, #tpu.memory_space<vmem>>, vector<1x128xf32>
    %5 = vector.broadcast %4 : vector<1x128xf32> to vector<8x128xf32>
    %6 = arith.addf %3, %5 : vector<8x128xf32>
    %cst_5 = arith.constant 0.000000e+00 : f32
    %7 = vector.broadcast %cst_5 : f32 to vector<8x128xf32>
    %8 = arith.maximumf %6, %7 : vector<8x128xf32>
    %9 = math.absf %6 : vector<8x128xf32>
    %cst_6 = arith.constant 0.000000e+00 : f32
    %10 = vector.broadcast %cst_6 : f32 to vector<8x128xf32>
    %11 = arith.subf %10, %9 : vector<8x128xf32>
    %12 = math.exp %11 : vector<8x128xf32>
    %13 = math.log1p %12 : vector<8x128xf32>
    %14 = arith.addf %8, %13 : vector<8x128xf32>
    %15 = arith.truncf %14 : vector<8x128xf32> to vector<8x128xbf16>
    %c0_7 = arith.constant 0 : index
    %c0_8 = arith.constant 0 : index
    %16 = vector.load %arg4[%c0_7, %c0_8] : memref<128x128xbf16, #tpu.memory_space<vmem>>, vector<128x128xbf16>
    %cst_9 = arith.constant dense<0.000000e+00> : vector<8x128xf32>
    %17 = tpu.matmul %15, %16, %cst_9 {dimension_numbers = #tpu.dot_dimension_numbers<[1], [0], [0], [1], [0, 0, 1, 1], [], []>} : vector<8x128xbf16>, vector<128x128xbf16>, vector<8x128xf32> -> vector<8x128xf32>
    %c0_10 = arith.constant 0 : index
    %c0_11 = arith.constant 0 : index
    %18 = vector.load %arg5[%c0_10, %c0_11] : memref<1x128xf32, #tpu.memory_space<vmem>>, vector<1x128xf32>
    %19 = vector.broadcast %18 : vector<1x128xf32> to vector<8x128xf32>
    %20 = arith.addf %17, %19 : vector<8x128xf32>
    %cst_12 = arith.constant 0.000000e+00 : f32
    %21 = vector.broadcast %cst_12 : f32 to vector<8x128xf32>
    %22 = arith.maximumf %20, %21 : vector<8x128xf32>
    %23 = math.absf %20 : vector<8x128xf32>
    %cst_13 = arith.constant 0.000000e+00 : f32
    %24 = vector.broadcast %cst_13 : f32 to vector<8x128xf32>
    %25 = arith.subf %24, %23 : vector<8x128xf32>
    %26 = math.exp %25 : vector<8x128xf32>
    %27 = math.log1p %26 : vector<8x128xf32>
    %28 = arith.addf %22, %27 : vector<8x128xf32>
    %29 = arith.truncf %28 : vector<8x128xf32> to vector<8x128xbf16>
    %c0_14 = arith.constant 0 : index
    %c0_15 = arith.constant 0 : index
    %30 = vector.load %arg6[%c0_14, %c0_15] : memref<128x128xbf16, #tpu.memory_space<vmem>>, vector<128x128xbf16>
    %cst_16 = arith.constant dense<0.000000e+00> : vector<8x128xf32>
    %31 = tpu.matmul %29, %30, %cst_16 {dimension_numbers = #tpu.dot_dimension_numbers<[1], [0], [0], [1], [0, 0, 1, 1], [], []>} : vector<8x128xbf16>, vector<128x128xbf16>, vector<8x128xf32> -> vector<8x128xf32>
    %c0_17 = arith.constant 0 : index
    %c0_18 = arith.constant 0 : index
    %32 = vector.load %arg7[%c0_17, %c0_18] : memref<1x128xf32, #tpu.memory_space<vmem>>, vector<1x128xf32>
    %33 = vector.broadcast %32 : vector<1x128xf32> to vector<8x128xf32>
    %34 = arith.addf %31, %33 : vector<8x128xf32>
    %cst_19 = arith.constant dense<0xFF800000> : vector<8xf32>
    %35 = vector.multi_reduction <maximumf>, %34, %cst_19 [1] : vector<8x128xf32> to vector<8xf32>
    %36 = vector.shape_cast %35 : vector<8xf32> to vector<8x1xf32>
    %37 = vector.broadcast %36 : vector<8x1xf32> to vector<8x128xf32>
    %38 = arith.subf %34, %37 : vector<8x128xf32>
    %39 = math.exp %38 : vector<8x128xf32>
    %cst_20 = arith.constant dense<0.000000e+00> : vector<8xf32>
    %40 = vector.multi_reduction <add>, %39, %cst_20 [1] : vector<8x128xf32> to vector<8xf32>
    %41 = vector.shape_cast %40 : vector<8xf32> to vector<8x1xf32>
    %42 = vector.broadcast %41 : vector<8x1xf32> to vector<8x128xf32>
    %43 = arith.divf %39, %42 : vector<8x128xf32>
    %c0_21 = arith.constant 0 : index
    %c0_22 = arith.constant 0 : index
    %44 = vector.load %arg8[%c0_21, %c0_22] : memref<8x128xf32, #tpu.memory_space<vmem>>, vector<8x128xf32>
    tpu.vector_store %arg8[%c0_21, %c0_22], %43 {strides = array<i32>} : memref<8x128xf32, #tpu.memory_space<vmem>>, vector<8x128xf32>,
    return
  }
  func.func @transform_0(%arg0: i32) -> (i32, i32) {
    %c0_i32 = arith.constant 0 : i32
    %c0_i32_0 = arith.constant 0 : i32
    return %arg0, %c0_i32 : i32, i32
  }
  func.func @transform_1(%arg0: i32) -> (i32, i32) {
    %c0_i32 = arith.constant 0 : i32
    %c0_i32_0 = arith.constant 0 : i32
    %c0_i32_1 = arith.constant 0 : i32
    return %c0_i32, %c0_i32_0 : i32, i32
  }
  func.func @transform_2(%arg0: i32) -> (i32, i32) {
    %c0_i32 = arith.constant 0 : i32
    %c0_i32_0 = arith.constant 0 : i32
    %c0_i32_1 = arith.constant 0 : i32
    return %c0_i32, %c0_i32_0 : i32, i32
  }
  func.func @transform_3(%arg0: i32) -> (i32, i32) {
    %c0_i32 = arith.constant 0 : i32
    %c0_i32_0 = arith.constant 0 : i32
    %c0_i32_1 = arith.constant 0 : i32
    return %c0_i32, %c0_i32_0 : i32, i32
  }
  func.func @transform_4(%arg0: i32) -> (i32, i32) {
    %c0_i32 = arith.constant 0 : i32
    %c0_i32_0 = arith.constant 0 : i32
    %c0_i32_1 = arith.constant 0 : i32
    return %c0_i32, %c0_i32_0 : i32, i32
  }
  func.func @transform_5(%arg0: i32) -> (i32, i32) {
    %c0_i32 = arith.constant 0 : i32
    %c0_i32_0 = arith.constant 0 : i32
    %c0_i32_1 = arith.constant 0 : i32
    return %c0_i32, %c0_i32_0 : i32, i32
  }
  func.func @transform_6(%arg0: i32) -> (i32, i32) {
    %c0_i32 = arith.constant 0 : i32
    %c0_i32_0 = arith.constant 0 : i32
    %c0_i32_1 = arith.constant 0 : i32
    return %c0_i32, %c0_i32_0 : i32, i32
  }
  func.func @transform_7(%arg0: i32) -> (i32, i32) {
    %c0_i32 = arith.constant 0 : i32
    %c0_i32_0 = arith.constant 0 : i32
    return %arg0, %c0_i32 : i32, i32
  }
}

module attributes {stable_mosaic.version = 11 : i64} {
  func.func @encoder_kernel(%arg0: i32, %arg1: memref<8x64xf32, #tpu.memory_space<vmem>>, %arg2: memref<64x128xbf16, #tpu.memory_space<vmem>>, %arg3: memref<1x128xf32, #tpu.memory_space<vmem>>, %arg4: memref<128x128xbf16, #tpu.memory_space<vmem>>, %arg5: memref<1x128xf32, #tpu.memory_space<vmem>>, %arg6: memref<128x128xbf16, #tpu.memory_space<vmem>>, %arg7: memref<1x128xf32, #tpu.memory_space<vmem>>, %arg8: memref<8x128xf32, #tpu.memory_space<vmem>>) attributes {dimension_semantics = [#tpu.dimension_semantics<parallel>], iteration_bounds = array<i64: 1>, scalar_prefetch = 0 : i64, scratch_operands = 0 : i64, tpu.core_type = #tpu.core_type<tc>, window_params = [{transform_indices = @transform_0, window_bounds = array<i64: 8, 64>}, {pipeline_mode = #tpu.pipeline_mode<synchronous>, transform_indices = @transform_1, window_bounds = array<i64: 64, 128>}, {pipeline_mode = #tpu.pipeline_mode<synchronous>, transform_indices = @transform_2, window_bounds = array<i64: 1, 128>}, {pipeline_mode = #tpu.pipeline_mode<synchronous>, transform_indices = @transform_3, window_bounds = array<i64: 128, 128>}, {pipeline_mode = #tpu.pipeline_mode<synchronous>, transform_indices = @transform_4, window_bounds = array<i64: 1, 128>}, {pipeline_mode = #tpu.pipeline_mode<synchronous>, transform_indices = @transform_5, window_bounds = array<i64: 128, 128>}, {pipeline_mode = #tpu.pipeline_mode<synchronous>, transform_indices = @transform_6, window_bounds = array<i64: 1, 128>}, {transform_indices = @transform_7, window_bounds = array<i64: 8, 128>}]} {
    %c0 = arith.constant 0 : index
    %c0_0 = arith.constant 0 : index
    %0 = vector.load %arg1[%c0, %c0_0] : memref<8x64xf32, #tpu.memory_space<vmem>>, vector<8x64xf32>
    %1 = arith.truncf %0 : vector<8x64xf32> to vector<8x64xbf16>
    %c0_1 = arith.constant 0 : index
    %c0_2 = arith.constant 0 : index
    %2 = vector.load %arg2[%c0_1, %c0_2] : memref<64x128xbf16, #tpu.memory_space<vmem>>, vector<64x128xbf16>
    %cst = arith.constant dense<0.000000e+00> : vector<8x128xf32>
    %3 = tpu.matmul %1, %2, %cst {dimension_numbers = #tpu.dot_dimension_numbers<[1], [0], [0], [1], [0, 0, 1, 1], [], []>} : vector<8x64xbf16>, vector<64x128xbf16>, vector<8x128xf32> -> vector<8x128xf32>
    %c0_3 = arith.constant 0 : index
    %c0_4 = arith.constant 0 : index
    %4 = vector.load %arg3[%c0_3, %c0_4] : memref<1x128xf32, #tpu.memory_space<vmem>>, vector<1x128xf32>
    %5 = vector.broadcast %4 : vector<1x128xf32> to vector<8x128xf32>
    %6 = arith.addf %3, %5 : vector<8x128xf32>
    %cst_5 = arith.constant 0.000000e+00 : f32
    %7 = vector.broadcast %cst_5 : f32 to vector<8x128xf32>
    %8 = arith.maximumf %6, %7 : vector<8x128xf32>
    %9 = math.absf %6 : vector<8x128xf32>
    %cst_6 = arith.constant 0.000000e+00 : f32
    %10 = vector.broadcast %cst_6 : f32 to vector<8x128xf32>
    %11 = arith.subf %10, %9 : vector<8x128xf32>
    %12 = math.exp %11 : vector<8x128xf32>
    %13 = math.log1p %12 : vector<8x128xf32>
    %14 = arith.addf %8, %13 : vector<8x128xf32>
    %15 = arith.truncf %14 : vector<8x128xf32> to vector<8x128xbf16>
    %c0_7 = arith.constant 0 : index
    %c0_8 = arith.constant 0 : index
    %16 = vector.load %arg4[%c0_7, %c0_8] : memref<128x128xbf16, #tpu.memory_space<vmem>>, vector<128x128xbf16>
    %cst_9 = arith.constant dense<0.000000e+00> : vector<8x128xf32>
    %17 = tpu.matmul %15, %16, %cst_9 {dimension_numbers = #tpu.dot_dimension_numbers<[1], [0], [0], [1], [0, 0, 1, 1], [], []>} : vector<8x128xbf16>, vector<128x128xbf16>, vector<8x128xf32> -> vector<8x128xf32>
    %c0_10 = arith.constant 0 : index
    %c0_11 = arith.constant 0 : index
    %18 = vector.load %arg5[%c0_10, %c0_11] : memref<1x128xf32, #tpu.memory_space<vmem>>, vector<1x128xf32>
    %19 = vector.broadcast %18 : vector<1x128xf32> to vector<8x128xf32>
    %20 = arith.addf %17, %19 : vector<8x128xf32>
    %cst_12 = arith.constant 0.000000e+00 : f32
    %21 = vector.broadcast %cst_12 : f32 to vector<8x128xf32>
    %22 = arith.maximumf %20, %21 : vector<8x128xf32>
    %23 = math.absf %20 : vector<8x128xf32>
    %cst_13 = arith.constant 0.000000e+00 : f32
    %24 = vector.broadcast %cst_13 : f32 to vector<8x128xf32>
    %25 = arith.subf %24, %23 : vector<8x128xf32>
    %26 = math.exp %25 : vector<8x128xf32>
    %27 = math.log1p %26 : vector<8x128xf32>
    %28 = arith.addf %22, %27 : vector<8x128xf32>
    %29 = arith.truncf %28 : vector<8x128xf32> to vector<8x128xbf16>
    %c0_14 = arith.constant 0 : index
    %c0_15 = arith.constant 0 : index
    %30 = vector.load %arg6[%c0_14, %c0_15] : memref<128x128xbf16, #tpu.memory_space<vmem>>, vector<128x128xbf16>
    %cst_16 = arith.constant dense<0.000000e+00> : vector<8x128xf32>
    %31 = tpu.matmul %29, %30, %cst_16 {dimension_numbers = #tpu.dot_dimension_numbers<[1], [0], [0], [1], [0, 0, 1, 1], [], []>} : vector<8x128xbf16>, vector<128x128xbf16>, vector<8x128xf32> -> vector<8x128xf32>
    %c0_17 = arith.constant 0 : index
    %c0_18 = arith.constant 0 : index
    %32 = vector.load %arg7[%c0_17, %c0_18] : memref<1x128xf32, #tpu.memory_space<vmem>>, vector<1x128xf32>
    %33 = vector.broadcast %32 : vector<1x128xf32> to vector<8x128xf32>
    %34 = arith.addf %31, %33 : vector<8x128xf32>
    %cst_19 = arith.constant dense<0xFF800000> : vector<8xf32>
    %35 = vector.multi_reduction <maximumf>, %34, %cst_19 [1] : vector<8x128xf32> to vector<8xf32>
    %36 = vector.shape_cast %35 : vector<8xf32> to vector<8x1xf32>
    %37 = vector.broadcast %36 : vector<8x1xf32> to vector<8x128xf32>
    %38 = arith.subf %34, %37 : vector<8x128xf32>
    %39 = math.exp %38 : vector<8x128xf32>
    %cst_20 = arith.constant dense<0.000000e+00> : vector<8xf32>
    %40 = vector.multi_reduction <add>, %39, %cst_20 [1] : vector<8x128xf32> to vector<8xf32>
    %41 = vector.shape_cast %40 : vector<8xf32> to vector<8x1xf32>
    %42 = vector.broadcast %41 : vector<8x1xf32> to vector<8x128xf32>
    %43 = arith.divf %39, %42 : vector<8x128xf32>
    %c0_21 = arith.constant 0 : index
    %c0_22 = arith.constant 0 : index
    %44 = vector.load %arg8[%c0_21, %c0_22] : memref<8x128xf32, #tpu.memory_space<vmem>>, vector<8x128xf32>
    tpu.vector_store %arg8[%c0_21, %c0_22], %43 {strides = array<i32>} : memref<8x128xf32, #tpu.memory_space<vmem>>, vector<8x128xf32>,
    return
  }
  func.func @transform_0(%arg0: i32) -> (i32, i32) {
    %c0_i32 = arith.constant 0 : i32
    %c0_i32_0 = arith.constant 0 : i32
    return %arg0, %c0_i32 : i32, i32
  }
  func.func @transform_1(%arg0: i32) -> (i32, i32) {
    %c0_i32 = arith.constant 0 : i32
    %c0_i32_0 = arith.constant 0 : i32
    %c0_i32_1 = arith.constant 0 : i32
    return %c0_i32, %c0_i32_0 : i32, i32
  }
  func.func @transform_2(%arg0: i32) -> (i32, i32) {
    %c0_i32 = arith.constant 0 : i32
    %c0_i32_0 = arith.constant 0 : i32
    %c0_i32_1 = arith.constant 0 : i32
    return %c0_i32, %c0_i32_0 : i32, i32
  }
  func.func @transform_3(%arg0: i32) -> (i32, i32) {
    %c0_i32 = arith.constant 0 : i32
    %c0_i32_0 = arith.constant 0 : i32
    %c0_i32_1 = arith.constant 0 : i32
    return %c0_i32, %c0_i32_0 : i32, i32
  }
  func.func @transform_4(%arg0: i32) -> (i32, i32) {
    %c0_i32 = arith.constant 0 : i32
    %c0_i32_0 = arith.constant 0 : i32
    %c0_i32_1 = arith.constant 0 : i32
    return %c0_i32, %c0_i32_0 : i32, i32
  }
  func.func @transform_5(%arg0: i32) -> (i32, i32) {
    %c0_i32 = arith.constant 0 : i32
    %c0_i32_0 = arith.constant 0 : i32
    %c0_i32_1 = arith.constant 0 : i32
    return %c0_i32, %c0_i32_0 : i32, i32
  }
  func.func @transform_6(%arg0: i32) -> (i32, i32) {
    %c0_i32 = arith.constant 0 : i32
    %c0_i32_0 = arith.constant 0 : i32
    %c0_i32_1 = arith.constant 0 : i32
    return %c0_i32, %c0_i32_0 : i32, i32
  }
  func.func @transform_7(%arg0: i32) -> (i32, i32) {
    %c0_i32 = arith.constant 0 : i32
    %c0_i32_0 = arith.constant 0 : i32
    return %arg0, %c0_i32 : i32, i32
  }
}

</mosaic_0001>

<bundles_post_ra>
// kernel: tpu_custom_call.1
= control target key start
LH: loop header
LB: loop body
LE: loop exit
PB: predicated region body
PF: predicated region fallthrough
CT: control target
= control target key end

     0   :  { %12 = vsyncpa [#allocation3], 0  ;;  %s702_s0 = inlined_call_operand.hbm [shape: f32[8,64], index: 0, kind: input, shape index: {}]   ;;  %s703_s1 = inlined_call_operand.hbm [shape: bf16[64,128], index: 1, kind: input, shape index: {}]   ;;  %s704_s2 = inlined_call_operand.vmem [shape: f32[1,128], index: 2, kind: input, shape index: {}]   ;;  %s705_s3 = inlined_call_operand.hbm [shape: bf16[128,128], index: 3, kind: input, shape index: {}]   ;;  %s706_s4 = inlined_call_operand.vmem [shape: f32[1,128], index: 4, kind: input, shape index: {}]   ;;  %s707_s5 = inlined_call_operand.hbm [shape: bf16[128,128], index: 5, kind: input, shape index: {}]   ;;  %s708_s6 = inlined_call_operand.vmem [shape: f32[1,128], index: 6, kind: input, shape index: {}]   ;;  %s709_s7 = inlined_call_operand.hbm [shape: f32[8,128], index: 7, kind: output, shape index: {}]  }
   0x1   :  { %13 = vsyncpa [#allocation6], 0 }
   0x2   :  { %14 = vsyncpa [#allocation9], 0  ;;  %s31_s26 = sshll.u32 %s703_s1, 4  ;;  %s32_s26 = int_to_ptr.hbm [resolvable:$true] %s31_s26 }
   0x3   :  { %15 = vsyncpa [#allocation4], 0  ;;  %s631_s27 = smov [#allocation5]   ;;  %s21_s8 = sshll.u32 %s702_s0, 4  ;;  %s22_s8 = int_to_ptr.hbm [resolvable:$true] %s21_s8 }
   0x4   :  { %s33_s28 = sshll.u32 %s631_s27, 4  ;;  %s632_s9 = smov 64   ;;  %s34_s28 = int_to_ptr.vmem [resolvable:$true] %s33_s28 }
   0x5   :  { %s633_s10 = smov 4   ;;  %s634_s11 = smov [#allocation2]  }
   0x6   :  { %39 = dma.hbm_to_vmem [thread:$0]  %s32_s26, 512, %s34_s28, [#allocation6], %s632_s9, %s632_s9, %s633_s10  }
   0x7   :  { %s23_s12 = sshll.u32 %s634_s11, 4  ;;  %s46_s15 = sshll.u32 %s705_s3, 4  ;;  %s24_s12 = int_to_ptr.vmem [resolvable:$true] %s23_s12  ;;  %s47_s15 = int_to_ptr.hbm [resolvable:$true] %s46_s15 }
   0x8   :  { %26 = dma.hbm_to_vmem [thread:$0]  %s22_s8, 128, %s24_s12, [#allocation3]  }
   0x9   :  { %s61_s17 = sshll.u32 %s707_s5, 4  ;;  %s635_s18 = smov [#allocation7]   ;;  %s62_s17 = int_to_ptr.hbm [resolvable:$true] %s61_s17 }
   0xa   :  { %s48_s19 = sshll.u32 %s635_s18, 4  ;;  %s636_s0 = smov [#allocation8]   ;;  %s49_s19 = int_to_ptr.vmem [resolvable:$true] %s48_s19 }
   0xb   :  { %54 = dma.hbm_to_vmem [thread:$0]  %s47_s15, 1024, %s49_s19, [#allocation6], %s632_s9, %s632_s9, %s633_s10  }
   0xc   :  { %s63_s20 = sshll.u32 %s636_s0, 4  ;;  %s64_s20 = int_to_ptr.vmem [resolvable:$true] %s63_s20 }
   0xd   :  { %69 = dma.hbm_to_vmem [thread:$0]  %s62_s17, 1024, %s64_s20, [#allocation9], %s632_s9, %s632_s9, %s633_s10  }
   0xe   :  { %623 = dma.done.wait [#allocation3], 128  }
   0xf   :  { %624 = vsyncadd [#allocation3], 4294967168 }
  0x10   :  { %625 = dma.done.wait [#allocation6], 1536  }
  0x11   :  { %626 = vsyncadd [#allocation6], 4294965760 }
  0x12   :  { %627 = dma.done.wait [#allocation9], 1024  }
  0x13   :  { %628 = vsyncadd [#allocation9], 4294966272  ;;  %v464_v0 = vld [vmem:[#allocation5 + $0x18] sm:$0xff]  ;;  %v463_v1 = vld [vmem:[#allocation5 + $0x10] sm:$0xff]  ;;  %vm127_vm0 = vcmask 523264   ;;  %s368_s26 = sshll.u32 %s709_s7, 4  ;;  %s369_s26 = int_to_ptr.hbm [resolvable:$true] %s368_s26 }
  0x14   :  { %135 = vmatpush.bf16.msra.mxu0 %v464_v0  ;;  %v462_v2 = vld [vmem:[#allocation5 + $0x8] sm:$0xff]  ;;  %v461_v3 = vld [vmem:[#allocation5] sm:$0xff]  ;;  %v89_v4 = vld [vmem:[#allocation2] sm:$0xff] }
  0x15   :  { %v90_v5 = vpack.c.bf16 %v89_v4, %v89_v4  ;;  %v472_v6 = vld [vmem:[#allocation7 + $0x38] sm:$0xff]  ;;  %v471_v7 = vld [vmem:[#allocation7 + $0x30] sm:$0xff]  ;;  %v470_v8 = vld [vmem:[#allocation7 + $0x28] sm:$0xff] }
  0x16   :  { %228 = vmatpush.bf16.msra.mxu1 %v472_v6  ;;  %v469_v9 = vld [vmem:[#allocation7 + $0x20] sm:$0xff]  ;;  %v468_v10 = vld [vmem:[#allocation7 + $0x18] sm:$0xff]  ;;  %v467_v11 = vld [vmem:[#allocation7 + $0x10] sm:$0xff] }
  0x17   :  { %v466_v12 = vld [vmem:[#allocation7 + $0x8] sm:$0xff]  ;;  %v465_v13 = vld [vmem:[#allocation7] sm:$0xff]  ;;  %v488_v14 = vld [vmem:[%s704_s2] ss:$0 sm:$0xff] }
  0x18   :  { %136 = vmatpush.bf16.msra.mxu0 %v463_v1  ;;  %v480_v33 = vld [vmem:[#allocation8 + $0x38] sm:$0xff]  ;;  %v479_v34 = vld [vmem:[#allocation8 + $0x30] sm:$0xff]  ;;  %v478_v35 = vld [vmem:[#allocation8 + $0x28] sm:$0xff] }
  0x19   :  { %325 = vmatpush.bf16.msra.mxu2 %v480_v33  ;;  %v477_v36 = vld [vmem:[#allocation8 + $0x20] sm:$0xff]  ;;  %v476_v37 = vld [vmem:[#allocation8 + $0x18] sm:$0xff]  ;;  %v475_v38 = vld [vmem:[#allocation8 + $0x10] sm:$0xff] }
  0x1a   :  { %229 = vmatpush.bf16.msra.mxu1 %v471_v7  ;;  %v474_v39 = vld [vmem:[#allocation8 + $0x8] sm:$0xff]  ;;  %v473_v40 = vld [vmem:[#allocation8] sm:$0xff]  ;;  %v489_v41 = vld [vmem:[%s706_s4] ss:$0 sm:$0xff] }
  0x1b   :  { %v490_v60 = vld [vmem:[%s708_s6] ss:$0 sm:$0xff]  ;;  %s637_s6 = smov [#allocation10]  }
  0x1c   :  { %137 = vmatpush.bf16.msra.mxu0 %v462_v2  ;;  %s366_s23 = sshll.u32 %s637_s6, 4  ;;  %s367_s23 = int_to_ptr.vmem [resolvable:$true] %s366_s23 }
  0x1d   :  { %326 = vmatpush.bf16.msra.mxu2 %v479_v34 }
  0x1e   :  { %230 = vmatpush.bf16.msra.mxu1 %v470_v8 }
  0x20   :  { %138 = vmatpush.bf16.msra.mxu0 %v461_v3 }
  0x21   :  { %327 = vmatpush.bf16.msra.mxu2 %v478_v35 }
  0x22   :  { %231 = vmatpush.bf16.msra.mxu1 %v469_v9 }
  0x23   :  { %396 = vmatmul.msk.bf16.vlgmr.msra.gmra.mxu0 %vm127_vm0, %v90_v5 }
  0x25   :  { %328 = vmatpush.bf16.msra.mxu2 %v477_v36 }
  0x26   :  { %232 = vmatpush.bf16.msra.mxu1 %v468_v10 }
  0x29   :  { %329 = vmatpush.bf16.msra.mxu2 %v476_v37 }
  0x2a   :  { %233 = vmatpush.bf16.msra.mxu1 %v467_v11 }
  0x2d   :  { %330 = vmatpush.bf16.msra.mxu2 %v475_v38 }
  0x2e   :  { %234 = vmatpush.bf16.msra.mxu1 %v466_v12 }
  0x31   :  { %331 = vmatpush.bf16.msra.mxu2 %v474_v39 }
  0x32   :  { %235 = vmatpush.bf16.msra.mxu1 %v465_v13 }
  0x35   :  { %332 = vmatpush.bf16.msra.mxu2 %v473_v40 }
  0xa0   :  { %v140_v15 = vpop.f32.mrf.mxu0 }
  0xa1   :  { %v141_v16 = vadd.f32 %v488_v14, %v140_v15 }
  0xa3   :  { %v145_v17 = vand.u32 2147483647, %v141_v16  ;;  %v144_v29 = vmax.f32 %v141_v16, 0.0 }
  0xa5   :  { %v146_v18 = vsub.f32 0.0, %v145_v17 }
  0xa7   :  { %v147_v19 = vmul.f32 1.442695, %v146_v18 }
  0xa8   :  { %v142_v20 = vpop.f32.mrf.mxu0 }
  0xa9   :  { %491 = vpow2.f32 %v147_v19 }
  0xaf   :  { %v492_v21 = vpop.eup %491 }
  0xb0   :  { %v149_v22 = vadd.f32 1.0, %v492_v21  ;;  %v152_v23 = vmul.f32 -0.5, %v492_v21  ;;  %v155_v25 = vand.u32 2147483647, %v492_v21 }
  0xb2   :  { %493 = vlog2.f32 %v149_v22  ;;  %v153_v24 = vadd.f32 1.0, %v152_v23  ;;  %vm156_vm1 = vcmp.lt.f32.partialorder %v155_v25, 0.0004427343 }
  0xb4   :  { %v154_v28 = vmul.f32 %v492_v21, %v153_v24 }
  0xb8   :  { %v494_v26 = vpop.eup %493 }
  0xb9   :  { %v151_v27 = vmul.f32 0.6931472, %v494_v26 }
  0xbb   :  { %v157_v30 = vsel %vm156_vm1, %v154_v28, %v151_v27 }
  0xbc   :  { %v158_v31 = vadd.f32 %v157_v30, %v144_v29 }
  0xbe   :  { %v159_v32 = vpack.c.bf16 %v158_v31, %v158_v31 }
  0xc0   :  { %236 = vmatmul.bf16.vlgmr.msra.gmra.mxu1 %v159_v32 }
 0x13d   :  { %v237_v42 = vpop.f32.mrf.mxu1 }
 0x13e   :  { %v238_v43 = vadd.f32 %v489_v41, %v237_v42 }
 0x140   :  { %v242_v44 = vand.u32 2147483647, %v238_v43  ;;  %v241_v56 = vmax.f32 %v238_v43, 0.0 }
 0x142   :  { %v243_v45 = vsub.f32 0.0, %v242_v44 }
 0x144   :  { %v244_v46 = vmul.f32 1.442695, %v243_v45 }
 0x145   :  { %v239_v47 = vpop.f32.mrf.mxu1 }
 0x146   :  { %495 = vpow2.f32 %v244_v46 }
 0x14c   :  { %v496_v48 = vpop.eup %495 }
 0x14d   :  { %v246_v49 = vadd.f32 1.0, %v496_v48  ;;  %v249_v50 = vmul.f32 -0.5, %v496_v48  ;;  %v252_v52 = vand.u32 2147483647, %v496_v48 }
 0x14f   :  { %497 = vlog2.f32 %v246_v49  ;;  %v250_v51 = vadd.f32 1.0, %v249_v50  ;;  %vm253_vm2 = vcmp.lt.f32.partialorder %v252_v52, 0.0004427343 }
 0x151   :  { %v251_v55 = vmul.f32 %v496_v48, %v250_v51 }
 0x155   :  { %v498_v53 = vpop.eup %497 }
 0x156   :  { %v248_v54 = vmul.f32 0.6931472, %v498_v53 }
 0x158   :  { %v254_v57 = vsel %vm253_vm2, %v251_v55, %v248_v54 }
 0x159   :  { %v255_v58 = vadd.f32 %v254_v57, %v241_v56 }
 0x15b   :  { %v256_v59 = vpack.c.bf16 %v255_v58, %v255_v58 }
 0x15d   :  { %333 = vmatmul.bf16.vlgmr.msra.gmra.mxu2 %v256_v59 }
 0x1e0   :  { %v334_v61 = vpop.f32.mrf.mxu2 }
 0x1e1   :  { %v335_v62 = vadd.f32 %v490_v60, %v334_v61 }
 0x1e3   :  { %338 = vmax.xlane.f32.xlu0 %v335_v62 }
 0x1e8   :  { %v336_v63 = vpop.f32.mrf.mxu2 }
 0x256   :  { %v339_v0 = vpop.xlane.xlu0 %338 }
 0x257   :  { %v340_v1 = vsub.f32 %v335_v62, %v339_v0 }
 0x259   :  { %v341_v2 = vmul.f32 1.442695, %v340_v1 }
 0x25b   :  { %499 = vpow2.f32 %v341_v2 }
 0x261   :  { %v500_v3 = vpop.eup %499 }
 0x262   :  { %343 = vadd.xlane.f32.xlu0 %v500_v3 }
 0x2d5   :  { %v344_v4 = vpop.xlane.xlu0 %343 }
 0x2d6   :  { %501 = vrcp.f32 %v344_v4  ;;  %v356_v8 = vand.u32 2147483648, %v344_v4  ;;  %v354_v10 = vand.u32 2147483647, %v344_v4  ;;  %vm350_vm4 = vweird.f32 %v344_v4 }
 0x2d8   :  { %v357_v12 = vor.u32 1.1754944e-38, %v356_v8  ;;  %vm355_vm6 = vcmp.eq.f32.partialorder %v354_v10, 8.507059e+37 }
 0x2dc   :  { %v502_v5 = vpop.eup %501 }
 0x2dd   :  { %v346_v6 = vmul.f32 %v502_v5, %v344_v4  ;;  %vm351_vm3 = vweird.f32 %v502_v5 }
 0x2de   :  { %vm352_vm5 = vmor %vm350_vm4, %vm351_vm3 }
 0x2df   :  { %v347_v7 = vsub.f32 1.0, %v346_v6 }
 0x2e1   :  { %v348_v9 = vmul.f32 %v502_v5, %v347_v7 }
 0x2e3   :  { %v349_v11 = vadd.f32 %v502_v5, %v348_v9 }
 0x2e5   :  { %v353_v13 = vsel %vm352_vm5, %v502_v5, %v349_v11 }
 0x2e6   :  { %v358_v14 = vsel %vm355_vm6, %v357_v12, %v353_v13 }
 0x2e7   :  { %v359_v15 = vmul.f32 %v500_v3, %v358_v14 }
 0x2e9   :  { %360 = vst [vmem:[#allocation10] sm:$0xff] %v359_v15 }
 0x2ea   :  { %371 = dma.vmem_to_hbm [thread:$0]  %s367_s23, 128, %s369_s26, [#allocation4]  }
 0x2eb   :  { %629 = dma.done.wait [#allocation4], 128  }
 0x2ec   :  { %630 = vsyncadd [#allocation4], 4294967168 }
 0x2ed   :  { %376 = vsyncpa [#allocation3], 1 }
 0x2ee   :  { %377 = vsyncpa [#allocation6], 1 }
 0x2ef   :  { %378 = vsyncpa [#allocation9], 1 }
 0x2f0   :  { %379 = vsyncpa [#allocation4], 1 }

// kernel: tpu_custom_call.1
= control target key start
LH: loop header
LB: loop body
LE: loop exit
PB: predicated region body
PF: predicated region fallthrough
CT: control target
= control target key end

     0   :  { %12 = vsyncpa [#allocation3], 0  ;;  %s702_s0 = inlined_call_operand.hbm [shape: f32[8,64], index: 0, kind: input, shape index: {}]   ;;  %s703_s1 = inlined_call_operand.hbm [shape: bf16[64,128], index: 1, kind: input, shape index: {}]   ;;  %s704_s2 = inlined_call_operand.vmem [shape: f32[1,128], index: 2, kind: input, shape index: {}]   ;;  %s705_s3 = inlined_call_operand.hbm [shape: bf16[128,128], index: 3, kind: input, shape index: {}]   ;;  %s706_s4 = inlined_call_operand.vmem [shape: f32[1,128], index: 4, kind: input, shape index: {}]   ;;  %s707_s5 = inlined_call_operand.hbm [shape: bf16[128,128], index: 5, kind: input, shape index: {}]   ;;  %s708_s6 = inlined_call_operand.vmem [shape: f32[1,128], index: 6, kind: input, shape index: {}]   ;;  %s709_s7 = inlined_call_operand.hbm [shape: f32[8,128], index: 7, kind: output, shape index: {}]  }
   0x1   :  { %13 = vsyncpa [#allocation6], 0 }
   0x2   :  { %14 = vsyncpa [#allocation9], 0  ;;  %s31_s26 = sshll.u32 %s703_s1, 4  ;;  %s32_s26 = int_to_ptr.hbm [resolvable:$true] %s31_s26 }
   0x3   :  { %15 = vsyncpa [#allocation4], 0  ;;  %s631_s27 = smov [#allocation5]   ;;  %s21_s8 = sshll.u32 %s702_s0, 4  ;;  %s22_s8 = int_to_ptr.hbm [resolvable:$true] %s21_s8 }
   0x4   :  { %s33_s28 = sshll.u32 %s631_s27, 4  ;;  %s632_s9 = smov 64   ;;  %s34_s28 = int_to_ptr.vmem [resolvable:$true] %s33_s28 }
   0x5   :  { %s633_s10 = smov 4   ;;  %s634_s11 = smov [#allocation2]  }
   0x6   :  { %39 = dma.hbm_to_vmem [thread:$0]  %s32_s26, 512, %s34_s28, [#allocation6], %s632_s9, %s632_s9, %s633_s10  }
   0x7   :  { %s23_s12 = sshll.u32 %s634_s11, 4  ;;  %s46_s15 = sshll.u32 %s705_s3, 4  ;;  %s24_s12 = int_to_ptr.vmem [resolvable:$true] %s23_s12  ;;  %s47_s15 = int_to_ptr.hbm [resolvable:$true] %s46_s15 }
   0x8   :  { %26 = dma.hbm_to_vmem [thread:$0]  %s22_s8, 128, %s24_s12, [#allocation3]  }
   0x9   :  { %s61_s17 = sshll.u32 %s707_s5, 4  ;;  %s635_s18 = smov [#allocation7]   ;;  %s62_s17 = int_to_ptr.hbm [resolvable:$true] %s61_s17 }
   0xa   :  { %s48_s19 = sshll.u32 %s635_s18, 4  ;;  %s636_s0 = smov [#allocation8]   ;;  %s49_s19 = int_to_ptr.vmem [resolvable:$true] %s48_s19 }
   0xb   :  { %54 = dma.hbm_to_vmem [thread:$0]  %s47_s15, 1024, %s49_s19, [#allocation6], %s632_s9, %s632_s9, %s633_s10  }
   0xc   :  { %s63_s20 = sshll.u32 %s636_s0, 4  ;;  %s64_s20 = int_to_ptr.vmem [resolvable:$true] %s63_s20 }
   0xd   :  { %69 = dma.hbm_to_vmem [thread:$0]  %s62_s17, 1024, %s64_s20, [#allocation9], %s632_s9, %s632_s9, %s633_s10  }
   0xe   :  { %623 = dma.done.wait [#allocation3], 128  }
   0xf   :  { %624 = vsyncadd [#allocation3], 4294967168 }
  0x10   :  { %625 = dma.done.wait [#allocation6], 1536  }
  0x11   :  { %626 = vsyncadd [#allocation6], 4294965760 }
  0x12   :  { %627 = dma.done.wait [#allocation9], 1024  }
  0x13   :  { %628 = vsyncadd [#allocation9], 4294966272  ;;  %v464_v0 = vld [vmem:[#allocation5 + $0x18] sm:$0xff]  ;;  %v463_v1 = vld [vmem:[#allocation5 + $0x10] sm:$0xff]  ;;  %vm127_vm0 = vcmask 523264   ;;  %s368_s26 = sshll.u32 %s709_s7, 4  ;;  %s369_s26 = int_to_ptr.hbm [resolvable:$true] %s368_s26 }
  0x14   :  { %135 = vmatpush.bf16.msra.mxu0 %v464_v0  ;;  %v462_v2 = vld [vmem:[#allocation5 + $0x8] sm:$0xff]  ;;  %v461_v3 = vld [vmem:[#allocation5] sm:$0xff]  ;;  %v89_v4 = vld [vmem:[#allocation2] sm:$0xff] }
  0x15   :  { %v90_v5 = vpack.c.bf16 %v89_v4, %v89_v4  ;;  %v472_v6 = vld [vmem:[#allocation7 + $0x38] sm:$0xff]  ;;  %v471_v7 = vld [vmem:[#allocation7 + $0x30] sm:$0xff]  ;;  %v470_v8 = vld [vmem:[#allocation7 + $0x28] sm:$0xff] }
  0x16   :  { %228 = vmatpush.bf16.msra.mxu1 %v472_v6  ;;  %v469_v9 = vld [vmem:[#allocation7 + $0x20] sm:$0xff]  ;;  %v468_v10 = vld [vmem:[#allocation7 + $0x18] sm:$0xff]  ;;  %v467_v11 = vld [vmem:[#allocation7 + $0x10] sm:$0xff] }
  0x17   :  { %v466_v12 = vld [vmem:[#allocation7 + $0x8] sm:$0xff]  ;;  %v465_v13 = vld [vmem:[#allocation7] sm:$0xff]  ;;  %v488_v14 = vld [vmem:[%s704_s2] ss:$0 sm:$0xff] }
  0x18   :  { %136 = vmatpush.bf16.msra.mxu0 %v463_v1  ;;  %v480_v33 = vld [vmem:[#allocation8 + $0x38] sm:$0xff]  ;;  %v479_v34 = vld [vmem:[#allocation8 + $0x30] sm:$0xff]  ;;  %v478_v35 = vld [vmem:[#allocation8 + $0x28] sm:$0xff] }
  0x19   :  { %325 = vmatpush.bf16.msra.mxu2 %v480_v33  ;;  %v477_v36 = vld [vmem:[#allocation8 + $0x20] sm:$0xff]  ;;  %v476_v37 = vld [vmem:[#allocation8 + $0x18] sm:$0xff]  ;;  %v475_v38 = vld [vmem:[#allocation8 + $0x10] sm:$0xff] }
  0x1a   :  { %229 = vmatpush.bf16.msra.mxu1 %v471_v7  ;;  %v474_v39 = vld [vmem:[#allocation8 + $0x8] sm:$0xff]  ;;  %v473_v40 = vld [vmem:[#allocation8] sm:$0xff]  ;;  %v489_v41 = vld [vmem:[%s706_s4] ss:$0 sm:$0xff] }
  0x1b   :  { %v490_v60 = vld [vmem:[%s708_s6] ss:$0 sm:$0xff]  ;;  %s637_s6 = smov [#allocation10]  }
  0x1c   :  { %137 = vmatpush.bf16.msra.mxu0 %v462_v2  ;;  %s366_s23 = sshll.u32 %s637_s6, 4  ;;  %s367_s23 = int_to_ptr.vmem [resolvable:$true] %s366_s23 }
  0x1d   :  { %326 = vmatpush.bf16.msra.mxu2 %v479_v34 }
  0x1e   :  { %230 = vmatpush.bf16.msra.mxu1 %v470_v8 }
  0x20   :  { %138 = vmatpush.bf16.msra.mxu0 %v461_v3 }
  0x21   :  { %327 = vmatpush.bf16.msra.mxu2 %v478_v35 }
  0x22   :  { %231 = vmatpush.bf16.msra.mxu1 %v469_v9 }
  0x23   :  { %396 = vmatmul.msk.bf16.vlgmr.msra.gmra.mxu0 %vm127_vm0, %v90_v5 }
  0x25   :  { %328 = vmatpush.bf16.msra.mxu2 %v477_v36 }
  0x26   :  { %232 = vmatpush.bf16.msra.mxu1 %v468_v10 }
  0x29   :  { %329 = vmatpush.bf16.msra.mxu2 %v476_v37 }
  0x2a   :  { %233 = vmatpush.bf16.msra.mxu1 %v467_v11 }
  0x2d   :  { %330 = vmatpush.bf16.msra.mxu2 %v475_v38 }
  0x2e   :  { %234 = vmatpush.bf16.msra.mxu1 %v466_v12 }
  0x31   :  { %331 = vmatpush.bf16.msra.mxu2 %v474_v39 }
  0x32   :  { %235 = vmatpush.bf16.msra.mxu1 %v465_v13 }
  0x35   :  { %332 = vmatpush.bf16.msra.mxu2 %v473_v40 }
  0xa0   :  { %v140_v15 = vpop.f32.mrf.mxu0 }
  0xa1   :  { %v141_v16 = vadd.f32 %v488_v14, %v140_v15 }
  0xa3   :  { %v145_v17 = vand.u32 2147483647, %v141_v16  ;;  %v144_v29 = vmax.f32 %v141_v16, 0.0 }
  0xa5   :  { %v146_v18 = vsub.f32 0.0, %v145_v17 }
  0xa7   :  { %v147_v19 = vmul.f32 1.442695, %v146_v18 }
  0xa8   :  { %v142_v20 = vpop.f32.mrf.mxu0 }
  0xa9   :  { %491 = vpow2.f32 %v147_v19 }
  0xaf   :  { %v492_v21 = vpop.eup %491 }
  0xb0   :  { %v149_v22 = vadd.f32 1.0, %v492_v21  ;;  %v152_v23 = vmul.f32 -0.5, %v492_v21  ;;  %v155_v25 = vand.u32 2147483647, %v492_v21 }
  0xb2   :  { %493 = vlog2.f32 %v149_v22  ;;  %v153_v24 = vadd.f32 1.0, %v152_v23  ;;  %vm156_vm1 = vcmp.lt.f32.partialorder %v155_v25, 0.0004427343 }
  0xb4   :  { %v154_v28 = vmul.f32 %v492_v21, %v153_v24 }
  0xb8   :  { %v494_v26 = vpop.eup %493 }
  0xb9   :  { %v151_v27 = vmul.f32 0.6931472, %v494_v26 }
  0xbb   :  { %v157_v30 = vsel %vm156_vm1, %v154_v28, %v151_v27 }
  0xbc   :  { %v158_v31 = vadd.f32 %v157_v30, %v144_v29 }
  0xbe   :  { %v159_v32 = vpack.c.bf16 %v158_v31, %v158_v31 }
  0xc0   :  { %236 = vmatmul.bf16.vlgmr.msra.gmra.mxu1 %v159_v32 }
 0x13d   :  { %v237_v42 = vpop.f32.mrf.mxu1 }
 0x13e   :  { %v238_v43 = vadd.f32 %v489_v41, %v237_v42 }
 0x140   :  { %v242_v44 = vand.u32 2147483647, %v238_v43  ;;  %v241_v56 = vmax.f32 %v238_v43, 0.0 }
 0x142   :  { %v243_v45 = vsub.f32 0.0, %v242_v44 }
 0x144   :  { %v244_v46 = vmul.f32 1.442695, %v243_v45 }
 0x145   :  { %v239_v47 = vpop.f32.mrf.mxu1 }
 0x146   :  { %495 = vpow2.f32 %v244_v46 }
 0x14c   :  { %v496_v48 = vpop.eup %495 }
 0x14d   :  { %v246_v49 = vadd.f32 1.0, %v496_v48  ;;  %v249_v50 = vmul.f32 -0.5, %v496_v48  ;;  %v252_v52 = vand.u32 2147483647, %v496_v48 }
 0x14f   :  { %497 = vlog2.f32 %v246_v49  ;;  %v250_v51 = vadd.f32 1.0, %v249_v50  ;;  %vm253_vm2 = vcmp.lt.f32.partialorder %v252_v52, 0.0004427343 }
 0x151   :  { %v251_v55 = vmul.f32 %v496_v48, %v250_v51 }
 0x155   :  { %v498_v53 = vpop.eup %497 }
 0x156   :  { %v248_v54 = vmul.f32 0.6931472, %v498_v53 }
 0x158   :  { %v254_v57 = vsel %vm253_vm2, %v251_v55, %v248_v54 }
 0x159   :  { %v255_v58 = vadd.f32 %v254_v57, %v241_v56 }
 0x15b   :  { %v256_v59 = vpack.c.bf16 %v255_v58, %v255_v58 }
 0x15d   :  { %333 = vmatmul.bf16.vlgmr.msra.gmra.mxu2 %v256_v59 }
 0x1e0   :  { %v334_v61 = vpop.f32.mrf.mxu2 }
 0x1e1   :  { %v335_v62 = vadd.f32 %v490_v60, %v334_v61 }
 0x1e3   :  { %338 = vmax.xlane.f32.xlu0 %v335_v62 }
 0x1e8   :  { %v336_v63 = vpop.f32.mrf.mxu2 }
 0x256   :  { %v339_v0 = vpop.xlane.xlu0 %338 }
 0x257   :  { %v340_v1 = vsub.f32 %v335_v62, %v339_v0 }
 0x259   :  { %v341_v2 = vmul.f32 1.442695, %v340_v1 }
 0x25b   :  { %499 = vpow2.f32 %v341_v2 }
 0x261   :  { %v500_v3 = vpop.eup %499 }
 0x262   :  { %343 = vadd.xlane.f32.xlu0 %v500_v3 }
 0x2d5   :  { %v344_v4 = vpop.xlane.xlu0 %343 }
 0x2d6   :  { %501 = vrcp.f32 %v344_v4  ;;  %v356_v8 = vand.u32 2147483648, %v344_v4  ;;  %v354_v10 = vand.u32 2147483647, %v344_v4  ;;  %vm350_vm4 = vweird.f32 %v344_v4 }
 0x2d8   :  { %v357_v12 = vor.u32 1.1754944e-38, %v356_v8  ;;  %vm355_vm6 = vcmp.eq.f32.partialorder %v354_v10, 8.507059e+37 }
 0x2dc   :  { %v502_v5 = vpop.eup %501 }
 0x2dd   :  { %v346_v6 = vmul.f32 %v502_v5, %v344_v4  ;;  %vm351_vm3 = vweird.f32 %v502_v5 }
 0x2de   :  { %vm352_vm5 = vmor %vm350_vm4, %vm351_vm3 }
 0x2df   :  { %v347_v7 = vsub.f32 1.0, %v346_v6 }
 0x2e1   :  { %v348_v9 = vmul.f32 %v502_v5, %v347_v7 }
 0x2e3   :  { %v349_v11 = vadd.f32 %v502_v5, %v348_v9 }
 0x2e5   :  { %v353_v13 = vsel %vm352_vm5, %v502_v5, %v349_v11 }
 0x2e6   :  { %v358_v14 = vsel %vm355_vm6, %v357_v12, %v353_v13 }
 0x2e7   :  { %v359_v15 = vmul.f32 %v500_v3, %v358_v14 }
 0x2e9   :  { %360 = vst [vmem:[#allocation10] sm:$0xff] %v359_v15 }
 0x2ea   :  { %371 = dma.vmem_to_hbm [thread:$0]  %s367_s23, 128, %s369_s26, [#allocation4]  }
 0x2eb   :  { %629 = dma.done.wait [#allocation4], 128  }
 0x2ec   :  { %630 = vsyncadd [#allocation4], 4294967168 }
 0x2ed   :  { %376 = vsyncpa [#allocation3], 1 }
 0x2ee   :  { %377 = vsyncpa [#allocation6], 1 }
 0x2ef   :  { %378 = vsyncpa [#allocation9], 1 }
 0x2f0   :  { %379 = vsyncpa [#allocation4], 1 }

</bundles_post_ra>
